<compile_context>
chip_gen: v7x
topology: tpu7x:2x2x1
jax: 0.10.0
libtpu: 0.0.40
codegen_flags: <defaults>
</compile_context>

<pallas_src>
import jax
import jax.numpy as jnp
from jax.experimental import pallas as pl
from jax.experimental.pallas import tpu as pltpu

LANE = 128
SUBLANE = 8


def _round_up(n, m):
    return ((n + m - 1) // m) * m


def mlp_kernel(x_ref, w1_ref, b1_ref, w2_ref, b2_ref, w3_ref, b3_ref, o_ref):
    # Layer 1: Linear(in -> 128pad) + ReLU   (MXU matmul, f32 accumulate)
    h1 = jnp.dot(x_ref[...], w1_ref[...], preferred_element_type=jnp.float32)
    h1 = jnp.maximum(h1 + b1_ref[...], 0.0)

    # Layer 2: Linear(128pad -> 128pad) + ReLU
    h2 = jnp.dot(h1, w2_ref[...], preferred_element_type=jnp.float32)
    h2 = jnp.maximum(h2 + b2_ref[...], 0.0)

    # Output layer: Linear(128pad -> 128pad), no activation. Lane-dense store.
    out = jnp.dot(h2, w3_ref[...], preferred_element_type=jnp.float32)
    o_ref[...] = out + b3_ref[...]


def _pad2d(a, rows, cols):
    """Zero-pad a 2-D array up to [rows, cols]."""
    return jnp.pad(a, ((0, rows - a.shape[0]), (0, cols - a.shape[1])))


def prepare_params(w1, b1, w2, b2, w3, b3):
    """Zero-pad feature dims to 128-lane multiples. Done once, outside the hot path.

    w_i: [in, out] (already transposed vs torch), b_i: [1, out].
    Padded columns/rows are exactly zero so they do not perturb the real
    outputs (zeros survive ReLU and the final slice removes them).
    """
    in_dim, hidden = w1.shape
    out_dim = w3.shape[1]
    hp = _round_up(hidden, LANE)    # 100 -> 128
    np_ = _round_up(out_dim, LANE)  # 8   -> 128

    w1p = _pad2d(w1, in_dim, hp)
    b1p = _pad2d(b1, 1, hp)
    w2p = _pad2d(w2, hp, hp)
    b2p = _pad2d(b2, 1, hp)
    w3p = _pad2d(w3, hp, np_)
    b3p = _pad2d(b3, 1, np_)
    return (w1p, b1p, w2p, b2p, w3p, b3p)


def mlp_forward(x, padded_params, out_dim, *, tb=512):
    """x: [B, in_dim] f32; padded_params from prepare_params(); returns [B, out_dim]."""
    w1, b1, w2, b2, w3, b3 = padded_params
    B, in_dim = x.shape
    hp = w1.shape[1]
    np_ = w3.shape[1]

    # Batch tile: multiple of 8 sublanes, capped at the (padded) batch size.
    tb = max(SUBLANE, min(tb, _round_up(B, SUBLANE)))
    bp = _round_up(B, tb)
    if bp != B:
        x = jnp.pad(x, ((0, bp - B), (0, 0)))

    grid = (bp // tb,)

    # x / out tiles indexed by the batch-grid step; weights & biases are
    # resident (constant index_map) so they stay pinned in VMEM across steps.
    resident = lambda shape: pl.BlockSpec(shape, lambda i: (0, 0))

    out_padded = pl.pallas_call(
        mlp_kernel,
        out_shape=jax.ShapeDtypeStruct((bp, np_), jnp.float32),
        grid_spec=pltpu.PrefetchScalarGridSpec(
            num_scalar_prefetch=0,
            grid=grid,
            in_specs=[
                pl.BlockSpec((tb, in_dim), lambda i: (i, 0)),  # x tile
                resident((in_dim, hp)),                        # w1
                resident((1, hp)),                             # b1
                resident((hp, hp)),                            # w2
                resident((1, hp)),                             # b2
                resident((hp, np_)),                           # w3
                resident((1, np_)),                            # b3
            ],
            out_specs=pl.BlockSpec((tb, np_), lambda i: (i, 0)),
        ),
        compiler_params=pltpu.CompilerParams(
            dimension_semantics=("parallel",),  # shard batch tiles across TCs (v7x megacore)
        ),
    )(x, w1, b1, w2, b2, w3, b3)

    # Slice away batch padding and the padded output lanes.
    return out_padded[:B, :out_dim]


def init_linear_params(key, in_features, out_features):
    """Deterministic init mimicking torch.nn.Linear's uniform(-1/sqrt(in), 1/sqrt(in)).
    Returns weight already transposed to [in, out] and bias as [1, out]."""
    kw, kb = jax.random.split(key)
    bound = 1.0 / jnp.sqrt(jnp.float32(in_features))
    w = jax.random.uniform(kw, (in_features, out_features), jnp.float32, -bound, bound)
    b = jax.random.uniform(kb, (1, out_features), jnp.float32, -bound, bound)
    return w, b


if __name__ == "__main__":
    input_dimension = 32
    output_dimension = 8
    hidden = 100
    batch = 24  # deliberately not a multiple of the batch tile -> exercises padding path

    root = jax.random.PRNGKey(0)
    k_x, k1, k2, k3 = jax.random.split(root, 4)

    x = jax.random.normal(k_x, (batch, input_dimension), jnp.float32)
    w1, b1 = init_linear_params(k1, input_dimension, hidden)
    w2, b2 = init_linear_params(k2, hidden, hidden)
    w3, b3 = init_linear_params(k3, hidden, output_dimension)

    padded = prepare_params(w1, b1, w2, b2, w3, b3)

    # Small batch tile so the 1-D batch grid actually takes multiple steps here.
    out = mlp_forward(x, padded, output_dimension, tb=16)
    out = jax.block_until_ready(out)
    assert out.shape == (batch, output_dimension)

    # Cross-check against a pure-JAX reference of the same forward pass (unpadded).
    ref = jnp.maximum(x @ w1 + b1, 0.0)
    ref = jnp.maximum(ref @ w2 + b2, 0.0)
    ref = ref @ w3 + b3
    assert jnp.allclose(out, ref, atol=1e-5, rtol=1e-5), "mismatch vs reference"

    print("KERNEL_OK")
</pallas_src>

<mosaic_0001>
module attributes {stable_mosaic.version = 11 : i64} {
  func.func @mlp_kernel(%arg0: i32, %arg1: memref<16x32xf32, #tpu.memory_space<vmem>>, %arg2: memref<32x128xf32, #tpu.memory_space<vmem>>, %arg3: memref<1x128xf32, #tpu.memory_space<vmem>>, %arg4: memref<128x128xf32, #tpu.memory_space<vmem>>, %arg5: memref<1x128xf32, #tpu.memory_space<vmem>>, %arg6: memref<128x128xf32, #tpu.memory_space<vmem>>, %arg7: memref<1x128xf32, #tpu.memory_space<vmem>>, %arg8: memref<16x128xf32, #tpu.memory_space<vmem>>) attributes {dimension_semantics = [#tpu.dimension_semantics<parallel>], iteration_bounds = array<i64: 2>, scalar_prefetch = 0 : i64, scratch_operands = 0 : i64, tpu.core_type = #tpu.core_type<tc>, window_params = [{transform_indices = @transform_0, window_bounds = array<i64: 16, 32>}, {pipeline_mode = #tpu.pipeline_mode<synchronous>, transform_indices = @transform_1, window_bounds = array<i64: 32, 128>}, {pipeline_mode = #tpu.pipeline_mode<synchronous>, transform_indices = @transform_2, window_bounds = array<i64: 1, 128>}, {pipeline_mode = #tpu.pipeline_mode<synchronous>, transform_indices = @transform_3, window_bounds = array<i64: 128, 128>}, {pipeline_mode = #tpu.pipeline_mode<synchronous>, transform_indices = @transform_4, window_bounds = array<i64: 1, 128>}, {pipeline_mode = #tpu.pipeline_mode<synchronous>, transform_indices = @transform_5, window_bounds = array<i64: 128, 128>}, {pipeline_mode = #tpu.pipeline_mode<synchronous>, transform_indices = @transform_6, window_bounds = array<i64: 1, 128>}, {transform_indices = @transform_7, window_bounds = array<i64: 16, 128>}]} {
    %c0 = arith.constant 0 : index
    %c0_0 = arith.constant 0 : index
    %0 = vector.load %arg1[%c0, %c0_0] : memref<16x32xf32, #tpu.memory_space<vmem>>, vector<16x32xf32>
    %c0_1 = arith.constant 0 : index
    %c0_2 = arith.constant 0 : index
    %1 = vector.load %arg2[%c0_1, %c0_2] : memref<32x128xf32, #tpu.memory_space<vmem>>, vector<32x128xf32>
    %cst = arith.constant dense<0.000000e+00> : vector<16x128xf32>
    %2 = tpu.matmul %0, %1, %cst {dimension_numbers = #tpu.dot_dimension_numbers<[1], [0], [0], [1], [0, 0, 1, 1], [], []>} : vector<16x32xf32>, vector<32x128xf32>, vector<16x128xf32> -> vector<16x128xf32>
    %c0_3 = arith.constant 0 : index
    %c0_4 = arith.constant 0 : index
    %3 = vector.load %arg3[%c0_3, %c0_4] : memref<1x128xf32, #tpu.memory_space<vmem>>, vector<1x128xf32>
    %4 = vector.broadcast %3 : vector<1x128xf32> to vector<16x128xf32>
    %5 = arith.addf %2, %4 : vector<16x128xf32>
    %cst_5 = arith.constant 0.000000e+00 : f32
    %6 = vector.broadcast %cst_5 : f32 to vector<16x128xf32>
    %7 = arith.maximumf %5, %6 : vector<16x128xf32>
    %c0_6 = arith.constant 0 : index
    %c0_7 = arith.constant 0 : index
    %8 = vector.load %arg4[%c0_6, %c0_7] : memref<128x128xf32, #tpu.memory_space<vmem>>, vector<128x128xf32>
    %cst_8 = arith.constant dense<0.000000e+00> : vector<16x128xf32>
    %9 = tpu.matmul %7, %8, %cst_8 {dimension_numbers = #tpu.dot_dimension_numbers<[1], [0], [0], [1], [0, 0, 1, 1], [], []>} : vector<16x128xf32>, vector<128x128xf32>, vector<16x128xf32> -> vector<16x128xf32>
    %c0_9 = arith.constant 0 : index
    %c0_10 = arith.constant 0 : index
    %10 = vector.load %arg5[%c0_9, %c0_10] : memref<1x128xf32, #tpu.memory_space<vmem>>, vector<1x128xf32>
    %11 = vector.broadcast %10 : vector<1x128xf32> to vector<16x128xf32>
    %12 = arith.addf %9, %11 : vector<16x128xf32>
    %cst_11 = arith.constant 0.000000e+00 : f32
    %13 = vector.broadcast %cst_11 : f32 to vector<16x128xf32>
    %14 = arith.maximumf %12, %13 : vector<16x128xf32>
    %c0_12 = arith.constant 0 : index
    %c0_13 = arith.constant 0 : index
    %15 = vector.load %arg6[%c0_12, %c0_13] : memref<128x128xf32, #tpu.memory_space<vmem>>, vector<128x128xf32>
    %cst_14 = arith.constant dense<0.000000e+00> : vector<16x128xf32>
    %16 = tpu.matmul %14, %15, %cst_14 {dimension_numbers = #tpu.dot_dimension_numbers<[1], [0], [0], [1], [0, 0, 1, 1], [], []>} : vector<16x128xf32>, vector<128x128xf32>, vector<16x128xf32> -> vector<16x128xf32>
    %c0_15 = arith.constant 0 : index
    %c0_16 = arith.constant 0 : index
    %17 = vector.load %arg7[%c0_15, %c0_16] : memref<1x128xf32, #tpu.memory_space<vmem>>, vector<1x128xf32>
    %18 = vector.broadcast %17 : vector<1x128xf32> to vector<16x128xf32>
    %19 = arith.addf %16, %18 : vector<16x128xf32>
    %c0_17 = arith.constant 0 : index
    %c0_18 = arith.constant 0 : index
    %20 = vector.load %arg8[%c0_17, %c0_18] : memref<16x128xf32, #tpu.memory_space<vmem>>, vector<16x128xf32>
    tpu.vector_store %arg8[%c0_17, %c0_18], %19 {strides = array<i32>} : memref<16x128xf32, #tpu.memory_space<vmem>>, vector<16x128xf32>,
    return
  }
  func.func @transform_0(%arg0: i32) -> (i32, i32) {
    %c0_i32 = arith.constant 0 : i32
    %c0_i32_0 = arith.constant 0 : i32
    return %arg0, %c0_i32 : i32, i32
  }
  func.func @transform_1(%arg0: i32) -> (i32, i32) {
    %c0_i32 = arith.constant 0 : i32
    %c0_i32_0 = arith.constant 0 : i32
    %c0_i32_1 = arith.constant 0 : i32
    return %c0_i32, %c0_i32_0 : i32, i32
  }
  func.func @transform_2(%arg0: i32) -> (i32, i32) {
    %c0_i32 = arith.constant 0 : i32
    %c0_i32_0 = arith.constant 0 : i32
    %c0_i32_1 = arith.constant 0 : i32
    return %c0_i32, %c0_i32_0 : i32, i32
  }
  func.func @transform_3(%arg0: i32) -> (i32, i32) {
    %c0_i32 = arith.constant 0 : i32
    %c0_i32_0 = arith.constant 0 : i32
    %c0_i32_1 = arith.constant 0 : i32
    return %c0_i32, %c0_i32_0 : i32, i32
  }
  func.func @transform_4(%arg0: i32) -> (i32, i32) {
    %c0_i32 = arith.constant 0 : i32
    %c0_i32_0 = arith.constant 0 : i32
    %c0_i32_1 = arith.constant 0 : i32
    return %c0_i32, %c0_i32_0 : i32, i32
  }
  func.func @transform_5(%arg0: i32) -> (i32, i32) {
    %c0_i32 = arith.constant 0 : i32
    %c0_i32_0 = arith.constant 0 : i32
    %c0_i32_1 = arith.constant 0 : i32
    return %c0_i32, %c0_i32_0 : i32, i32
  }
  func.func @transform_6(%arg0: i32) -> (i32, i32) {
    %c0_i32 = arith.constant 0 : i32
    %c0_i32_0 = arith.constant 0 : i32
    %c0_i32_1 = arith.constant 0 : i32
    return %c0_i32, %c0_i32_0 : i32, i32
  }
  func.func @transform_7(%arg0: i32) -> (i32, i32) {
    %c0_i32 = arith.constant 0 : i32
    %c0_i32_0 = arith.constant 0 : i32
    return %arg0, %c0_i32 : i32, i32
  }
}

</mosaic_0001>

<bundles_post_ra>
// kernel: tpu_custom_call.1
= control target key start
LH: loop header
LB: loop body
LE: loop exit
PB: predicated region body
PF: predicated region fallthrough
CT: control target
= control target key end

     0   :  { %12 = vsyncpa [#allocation3], 0  ;;  %s1588_s0 = inlined_call_operand.hbm [shape: f32[32,32], index: 0, kind: input, shape index: {}]   ;;  %s1589_s1 = inlined_call_operand.hbm [shape: f32[32,128], index: 1, kind: input, shape index: {}]   ;;  %s1590_s2 = inlined_call_operand.vmem [shape: f32[1,128], index: 2, kind: input, shape index: {}]   ;;  %s1591_s3 = inlined_call_operand.hbm [shape: f32[128,128], index: 3, kind: input, shape index: {}]   ;;  %s1592_s4 = inlined_call_operand.vmem [shape: f32[1,128], index: 4, kind: input, shape index: {}]   ;;  %s1593_s5 = inlined_call_operand.hbm [shape: f32[128,128], index: 5, kind: input, shape index: {}]   ;;  %s1594_s6 = inlined_call_operand.vmem [shape: f32[1,128], index: 6, kind: input, shape index: {}]   ;;  %s1595_s7 = inlined_call_operand.hbm [shape: f32[32,128], index: 7, kind: output, shape index: {}]  }
   0x1   :  { %14 = vsyncpa [#allocation3 + $0x1], 0 }
   0x2   :  { %15 = vsyncpa [#allocation6], 0 }
   0x3   :  { %16 = vsyncpa [#allocation9], 0 }
   0x4   :  { %17 = vsyncpa [#allocation4], 0 }
   0x5   :  { %19 = vsyncpa [#allocation4 + $0x1], 0  ;;  %s1298_s24 = smov 0   ;;  %s1300_s25 = smov 0  }
   0x6   :  { %s1302_s26 = smov 0   ;;  %s1304_s27 = smov 0  }
   0x7 LB: > { %s1319_s28 = sadd.s32 4294967295, %s1247_s27   ;;  %s756_s29 = sadd.s32 4294967294, %s1247_s27   ;;  %s1247_s27 = sphi %s1304_s27, %s1621_s27   ;;  %s1243_s26 = sphi %s1302_s26, %s1620_s26   ;;  %s1239_s25 = sphi %s1300_s25, %s1619_s25   ;;  %s1235_s24 = sphi %s1298_s24, %s1618_s24  }
   0x8   : > { %p45_p0 = scmp.ne.s32.totalorder %s1239_s25, %s1235_s24  ;;  %p1596_p1 = scmp.eq.s32.totalorder %s1319_s28, 0 }
   0x9   : > { %p201_p3 = scmp.eq.s32.totalorder %s756_s29, 1  ;;  %p757_p5 = scmp.ge.s32.totalorder %s1247_s27, 1 }
   0xa   : > { %p1328_p4 = por %p1596_p1, %p45_p0  ;;  %p208_p7 = scmp.lt.s32.totalorder %s1247_s27, 3 }
   0xb   : > { %p1333_p6 = por %p201_p3, %p45_p0  ;;  %s1249_s10 = smov [#allocation5]  }
   0xc   : > { %s1600_s30 = scalar_select %p1328_p4, 1, 0 }
   0xd   : > { %s1601_s8 = scalar_select %p1333_p6, 1, 0 }
   0xe   : > { %p1338_p8 = pnand %p757_p5, %p208_p7  ;;  %s220_s11 = sshll.u32 %s1249_s10, 4  ;;  %s1342_s11 = int_to_ptr.vmem [resolvable:$true] %s220_s11 }
   0xf   : > { %1602 = sst [smem:[#allocation15_spill]] %s1601_s8  ;;  %s1250_s13 = smov [#allocation7]  }
  0x10   : > { %s1603_s9 = scalar_select %p1338_p8, 1, 0 }
  0x11   : > { %p994_p9 = pneg %p1338_p8  ;;  %s236_s14 = sshll.u32 %s1250_s13, 4  ;;  %s1353_s14 = int_to_ptr.vmem [resolvable:$true] %s236_s14 }
  0x12   : > { %s1251_s15 = smov [#allocation8]   ;;  %s1059_s19 = scalar_lea.hbm %s1589_s1, 512 }
  0x13   : > { %p1349_p11 = pnand %p994_p9, %p1596_p1  ;;  %s1355_s16 = sshll.u32 %s1251_s15, 4  ;;  %s253_s16 = int_to_ptr.vmem [resolvable:$true] %s1355_s16 }
  0x14   : > { %p1060_p12 = scmp.ne.s32.totalorder %s1589_s1, %s1059_s19  ;;  %p1066_p5 = scmp.lt.u32.totalorder %s1059_s19, %s1589_s1 }
  0x15   : > { %p1365_p13 = pneg %p1349_p11 }
  0x17   : > { %p1062_p0 = pnand %p1365_p13, %p1060_p12 }
  0x19   : > { %p1063_p3 = pneg %p1062_p0 }
  0x1b   : > { %p1068_p7 = pnand %p1066_p5, %p1063_p3 }
  0x1d   : > { %1071 = shalt.err (!%p1068_p7)
}
  0x1e   : > { %s1072_s10 = scalar_lea.vmem %s1342_s11, 512  ;;  %p1080_p2 = scmp.lt.s32.totalorder %s1342_s11, %s1342_s11 }
  0x1f   : > { %p1073_p9 = scmp.ne.s32.totalorder %s1342_s11, %s1072_s10  ;;  %p1081_p6 = scmp.lt.s32.totalorder %s1072_s10, %s1072_s10 }
  0x21   : > { %p1075_p10 = pnand %p1073_p9, %p1365_p13  ;;  %p1082_p12 = por %p1081_p6, %p1080_p2 }
  0x23   : > { %p1076_p1 = pneg %p1075_p10 }
  0x25   : > { %p1083_p0 = pnand %p1082_p12, %p1076_p1 }
  0x27   : > { %1086 = shalt.err (!%p1083_p0)
}
  0x28   : > { %s1252_s13 = smov 128   ;;  %s1253_s15 = smov 8  }
  0x29   : > { %997 = dma.hbm_to_vmem [thread:$0]  (!%p1349_p11), %s1589_s1, 512, %s1342_s11, [#allocation6], %s1252_s13, %s1252_s13, %s1253_s15  }
  0x2a   : > { %s1087_s21 = scalar_lea.hbm %s1591_s3, 2048 }
  0x2b   : > { %p1088_p1 = scmp.ne.s32.totalorder %s1591_s3, %s1087_s21  ;;  %p1094_p10 = scmp.lt.u32.totalorder %s1087_s21, %s1591_s3 }
  0x2d   : > { %p1090_p2 = pnand %p1088_p1, %p1365_p13 }
  0x2f   : > { %p1091_p6 = pneg %p1090_p2 }
  0x31   : > { %p1096_p3 = pnand %p1094_p10, %p1091_p6 }
  0x33   : > { %1099 = shalt.err (!%p1096_p3)
}
  0x34   : > { %s1100_s11 = scalar_lea.vmem %s1353_s14, 2048  ;;  %p1108_p12 = scmp.lt.s32.totalorder %s1353_s14, %s1353_s14 }
  0x35   : > { %p1101_p5 = scmp.ne.s32.totalorder %s1353_s14, %s1100_s11  ;;  %p1109_p0 = scmp.lt.s32.totalorder %s1100_s11, %s1100_s11 }
  0x37   : > { %p1103_p7 = pnand %p1101_p5, %p1365_p13  ;;  %p1110_p1 = por %p1109_p0, %p1108_p12 }
  0x39   : > { %p1104_p9 = pneg %p1103_p7 }
  0x3b   : > { %p1111_p2 = pnand %p1110_p1, %p1104_p9 }
  0x3d   : > { %1114 = shalt.err (!%p1111_p2)
}
  0x3e   : > { %1000 = dma.hbm_to_vmem [thread:$0]  (!%p1349_p11), %s1591_s3, 2048, %s1353_s14, [#allocation6], %s1252_s13, %s1252_s13, %s1253_s15  }
  0x3f   : > { %s1115_s20 = scalar_lea.hbm %s1593_s5, 2048 }
  0x40   : > { %p1116_p6 = scmp.ne.s32.totalorder %s1593_s5, %s1115_s20  ;;  %p1122_p5 = scmp.lt.u32.totalorder %s1115_s20, %s1593_s5 }
  0x42   : > { %p1118_p10 = pnand %p1116_p6, %p1365_p13 }
  0x44   : > { %p1119_p3 = pneg %p1118_p10 }
  0x46   : > { %p1124_p7 = pnand %p1122_p5, %p1119_p3 }
  0x48   : > { %1127 = shalt.err (!%p1124_p7)
}
  0x49   : > { %s1128_s11 = scalar_lea.vmem %s253_s16, 2048  ;;  %p1136_p1 = scmp.lt.s32.totalorder %s253_s16, %s253_s16 }
  0x4a   : > { %p1129_p9 = scmp.ne.s32.totalorder %s253_s16, %s1128_s11  ;;  %p1137_p2 = scmp.lt.s32.totalorder %s1128_s11, %s1128_s11 }
  0x4c   : > { %p1131_p12 = pnand %p1129_p9, %p1365_p13  ;;  %p1138_p4 = por %p1137_p2, %p1136_p1 }
  0x4e   : > { %p1132_p0 = pneg %p1131_p12 }
  0x50   : > { %p1139_p8 = pnand %p1138_p4, %p1132_p0 }
  0x52   : > { %1142 = shalt.err (!%p1139_p8)
}
  0x53   : > { %1003 = dma.hbm_to_vmem [thread:$0]  (!%p1349_p11), %s1593_s5, 2048, %s253_s16, [#allocation9], %s1252_s13, %s1252_s13, %s1253_s15  }
  0x54   : > { %s1438_s22 = sadd.s32 1, %s1247_s27   ;;  %s32_s17 = sadd.s32 1, %s1243_s26 }
  0x55   : > { %s29_s12 = ssub.s32 %s1247_s27, %s1438_s22  ;;  %p39_p8 = scmp.ne.s32.totalorder %s1243_s26, %s1239_s25 }
  0x56   : > { %p30_p4 = scmp.eq.s32.totalorder %s29_s12, 0  ;;  %p40_p13 = scmp.eq.s32.totalorder %s1247_s27, 0 }
  0x57   : > { %p1015_p6 = scmp.lt.s32.totalorder %s1247_s27, 2  ;;  %p1606_p3 = scmp.eq.s32.totalorder %s1319_s28, 1 }
  0x58   : > { %s1448_s18 = scalar_select %p30_p4, %s1243_s26, %s32_s17  }
  0x59   : > { %p41_p10 = por %p40_p13, %p39_p8  ;;  %p1452_p5 = por %p1606_p3, %p39_p8 }
  0x5a   : > { %s269_s20 = sand.u32 1, %s1243_s26   ;;  %s781_s21 = sshll.u32 %s1247_s27, 8 }
  0x5b   : > { %s762_s16 = sshll.u32 %s269_s20, 4  ;;  %s1461_s10 = scalar_lea.hbm %s1588_s0, %s781_s21 }
  0x5c   : > { %s273_s11 = scalar_lea.vmem [#allocation2], %s762_s16  ;;  %p1463_p11 = pnand %p1015_p6, %p41_p10 }
  0x5d   : > { %s280_s14 = sshll.u32 %s273_s11, 4  ;;  %s1469_s12 = scalar_lea.sflag [#allocation3], %s269_s20  ;;  %s1467_s14 = int_to_ptr.vmem [resolvable:$true] %s280_s14 }
  0x5e   : > { %s1143_s17 = scalar_lea.hbm %s1461_s10, 256  ;;  %p1145_p9 = pneg %p1463_p11 }
  0x5f   : > { %p1144_p7 = scmp.ne.s32.totalorder %s1461_s10, %s1143_s17  ;;  %s1148_s23 = scalar_lea.hbm %s1588_s0, 512 }
  0x60   : > { %p1149_p1 = scmp.lt.u32.totalorder %s1461_s10, %s1588_s0  ;;  %p1150_p2 = scmp.lt.u32.totalorder %s1148_s23, %s1143_s17 }
  0x61   : > { %p1146_p12 = pnand %p1145_p9, %p1144_p7  ;;  %p1152_p8 = scmp.lt.u32.totalorder %s1143_s17, %s1461_s10 }
  0x62   : > { %p1151_p4 = por %p1150_p2, %p1149_p1 }
  0x63   : > { %p1147_p0 = pneg %p1146_p12 }
  0x64   : > { %p1153_p13 = por %p1152_p8, %p1151_p4 }
  0x66   : > { %p1154_p6 = pnand %p1153_p13, %p1147_p0 }
  0x68   : > { %1157 = shalt.err (!%p1154_p6)
}
  0x69   : > { %s1158_s20 = scalar_lea.vmem %s1467_s14, 256  ;;  %s1254_s21 = smov [#allocation2]  }
  0x6a   : > { %p1159_p10 = scmp.ne.s32.totalorder %s1467_s14, %s1158_s20  ;;  %s1163_s16 = sshll.u32 %s1254_s21, 4  ;;  %s1164_s16 = int_to_ptr.vmem [resolvable:$false] %s1163_s16 }
  0x6b   : > { %s1165_s29 = scalar_lea.vmem %s1164_s16, 512  ;;  %p1166_p12 = scmp.lt.s32.totalorder %s1467_s14, %s1164_s16 }
  0x6c   : > { %p1161_p3 = pnand %p1159_p10, %p1145_p9  ;;  %p1167_p1 = scmp.lt.s32.totalorder %s1165_s29, %s1158_s20 }
  0x6e   : > { %p1162_p7 = pneg %p1161_p3  ;;  %p1168_p2 = por %p1167_p1, %p1166_p12 }
  0x70   : > { %p1169_p4 = pnand %p1168_p2, %p1162_p7 }
  0x72   : > { %1172 = shalt.err (!%p1169_p4)
}
  0x73   : > { %1007 = dma.hbm_to_vmem [thread:$0]  (!%p1463_p11), %s1461_s10, 256, %s1467_s14, %s1469_s12, %s1252_s13, %s1252_s13, %s1253_s15  }
  0x74   : > { %p1609_p9 = scmp.ne.s32.totalorder %s1603_s9, 0 }
  0x75   : > { %s1503_s17 = sand.u32 (!%p1609_p9), 1, %s1239_s25   ;;  %p1610_p0 = scmp.ne.s32.totalorder (!%p1609_p9), %s1600_s30, 0 }
  0x76   : > { %292 = sbr.rel (%p1609_p9) target bundleno = 810 (0x32a), region = 48  ;;  %s766_s23 = sshll.u32 (!%p1609_p9), %s1503_s17, 4 }
  0x77   : > { %s295_s11 = scalar_lea.sflag (!%p1609_p9), [#allocation3], %s1503_s17  ;;  %s1509_s8 = scalar_lea.vmem (!%p1609_p9), [#allocation2], %s766_s23 }
  0x7d   : > { %1218 = dma.done.wait (%p1610_p0), %s295_s11, 256  }
  0x7e   : > { %1220 = vsyncadd (%p1610_p0), %s295_s11, 4294967040  ;;  %p1611_p11 = scmp.eq.s32.totalorder %s1319_s28, 0 }
  0x80   : > { %1222 = dma.done.wait (%p1611_p11), [#allocation6], 2560   ;;  %p1612_p8 = pmov %p1611_p11 }
  0x82   : > { %1224 = vsyncadd (%p1612_p8), [#allocation6], 4294964736  ;;  %p1613_p13 = pmov %p1612_p8 }
  0x83   : > { %p1614_p6 = pmov %p1612_p8 }
  0x84   : > { %1226 = dma.done.wait (%p1613_p13), [#allocation9], 2048  }
  0x85   : > { %1228 = vsyncadd (%p1614_p6), [#allocation9], 4294965248  ;;  %vm356_vm0 = vcmask 261120   ;;  %v345_v0 = vld [vmem:[#allocation5] sm:$0xff]  ;;  %v346_v1 = vld [vmem:[#allocation5 + $0x8] sm:$0xff]  ;;  %s340_s10 = scalar_lea.vmem [#allocation10], %s766_s23 }
  0x86   : > { %v347_v2 = vld [vmem:[#allocation5 + $0x10] sm:$0xff]  ;;  %v906_v3 = vpack.c.bf16 %v346_v1, %v345_v0  ;;  %v348_v4 = vld [vmem:[#allocation5 + $0x18] sm:$0xff]  ;;  %v440_v7 = vld [vmem:[#allocation7] sm:$0xff]  ;;  %s654_s14 = sshll.u32 %s340_s10, 4  ;;  %s782_s21 = sshll.u32 %s1319_s28, 8  ;;  %s1539_s14 = int_to_ptr.vmem [resolvable:$true] %s654_s14 }
  0x87   : > { %v343_v5 = vld [vmem:[%s1509_s8] sm:$0xff]  ;;  %v910_v6 = vpack.c.bf16 %v348_v4, %v347_v2  ;;  %v441_v8 = vld [vmem:[#allocation7 + $0x8] sm:$0xff]  ;;  %v443_v11 = vld [vmem:[#allocation7 + $0x18] sm:$0xff]  ;;  %s1544_s11 = scalar_lea.hbm %s1595_s7, %s782_s21  ;;  %s641_s23 = scalar_lea.sflag [#allocation4], %s1503_s17 }
  0x88   : > { %833 = vmatprep.mubr.msk.f32.mxu0 %vm356_vm0, %v343_v5  ;;  %v442_v9 = vld [vmem:[#allocation7 + $0x10] sm:$0xff]  ;;  %907 = vmatprep.subr.bf16.mxu0 %v906_v3  ;;  %v914_v10 = vpack.c.bf16 %v441_v8, %v440_v7  ;;  %v444_v13 = vld [vmem:[#allocation7 + $0x20] sm:$0xff]  ;;  %v445_v14 = vld [vmem:[#allocation7 + $0x28] sm:$0xff]  ;;  %s1255_s28 = smov [#allocation10]  }
  0x89   : > { %909 = vmatpush3.bf16.msra.mxu0 %v906_v3  ;;  %v918_v12 = vpack.c.bf16 %v443_v11, %v442_v9  ;;  %v922_v15 = vpack.c.bf16 %v445_v14, %v444_v13  ;;  %v344_v16 = vld [vmem:[%s1509_s8 + $0x8] sm:$0xff]  ;;  %v446_v17 = vld [vmem:[#allocation7 + $0x30] sm:$0xff]  ;;  %v448_v20 = vld [vmem:[#allocation7 + $0x40] sm:$0xff]  ;;  %s1173_s8 = scalar_lea.vmem %s1539_s14, 256  ;;  %s1177_s30 = sshll.u32 %s1255_s28, 4  ;;  %s1178_s30 = int_to_ptr.vmem [resolvable:$false] %s1177_s30 }
  0x8a   : > { %911 = vmatprep.subr.bf16.mxu0 %v910_v6  ;;  %915 = vmatprep.subr.bf16.mxu1 %v914_v10  ;;  %v447_v18 = vld [vmem:[#allocation7 + $0x38] sm:$0xff]  ;;  %v449_v21 = vld [vmem:[#allocation7 + $0x48] sm:$0xff]  ;;  %v450_v23 = vld [vmem:[#allocation7 + $0x50] sm:$0xff]  ;;  %p1174_p10 = scmp.ne.s32.totalorder %s1539_s14, %s1173_s8  ;;  %s1179_s9 = scalar_lea.vmem %s1178_s30, 512 }
  0x8b   : > { %917 = vmatpush3.bf16.msra.mxu1 %v914_v10  ;;  %v926_v19 = vpack.c.bf16 %v447_v18, %v446_v17  ;;  %v930_v22 = vpack.c.bf16 %v449_v21, %v448_v20  ;;  %v451_v24 = vld [vmem:[#allocation7 + $0x58] sm:$0xff]  ;;  %v452_v26 = vld [vmem:[#allocation7 + $0x60] sm:$0xff]  ;;  %v453_v27 = vld [vmem:[#allocation7 + $0x68] sm:$0xff]  ;;  %p1180_p12 = scmp.lt.s32.totalorder %s1539_s14, %s1178_s30  ;;  %p1181_p1 = scmp.lt.s32.totalorder %s1179_s9, %s1173_s8 }
  0x8c   : > { %919 = vmatprep.subr.bf16.mxu1 %v918_v12  ;;  %v934_v25 = vpack.c.bf16 %v451_v24, %v450_v23  ;;  %v938_v28 = vpack.c.bf16 %v453_v27, %v452_v26  ;;  %v454_v29 = vld [vmem:[#allocation7 + $0x70] sm:$0xff]  ;;  %v455_v30 = vld [vmem:[#allocation7 + $0x78] sm:$0xff]  ;;  %v540_v32 = vld [vmem:[#allocation8] sm:$0xff]  ;;  %p1175_p3 = pnand %p1174_p10, %p1452_p5 }
  0x8d   : > { %913 = vmatpush3.bf16.msra.mxu0 %v910_v6  ;;  %v942_v31 = vpack.c.bf16 %v455_v30, %v454_v29  ;;  %v541_v33 = vld [vmem:[#allocation8 + $0x8] sm:$0xff]  ;;  %v542_v34 = vld [vmem:[#allocation8 + $0x10] sm:$0xff]  ;;  %v543_v36 = vld [vmem:[#allocation8 + $0x18] sm:$0xff]  ;;  %p1182_p2 = por %p1181_p1, %p1180_p12 }
  0x8e   : > { %v946_v35 = vpack.c.bf16 %v541_v33, %v540_v32  ;;  %v950_v37 = vpack.c.bf16 %v543_v36, %v542_v34  ;;  %v544_v38 = vld [vmem:[#allocation8 + $0x20] sm:$0xff]  ;;  %v545_v39 = vld [vmem:[#allocation8 + $0x28] sm:$0xff]  ;;  %v546_v41 = vld [vmem:[#allocation8 + $0x30] sm:$0xff]  ;;  %p1176_p7 = pneg %p1175_p3 }
  0x8f   : > { %921 = vmatpush3.bf16.msra.mxu1 %v918_v12  ;;  %v954_v40 = vpack.c.bf16 %v545_v39, %v544_v38  ;;  %v547_v42 = vld [vmem:[#allocation8 + $0x38] sm:$0xff]  ;;  %v548_v44 = vld [vmem:[#allocation8 + $0x40] sm:$0xff]  ;;  %v549_v45 = vld [vmem:[#allocation8 + $0x48] sm:$0xff] }
  0x90   : > { %834 = vmatmul.mubr.msk.f32.vlgmr.msra.gmra.mrb[0].mxu0 %vm356_vm0, %v344_v16  ;;  %923 = vmatprep.subr.bf16.mxu1 %v922_v15  ;;  %v958_v43 = vpack.c.bf16 %v547_v42, %v546_v41  ;;  %v962_v46 = vpack.c.bf16 %v549_v45, %v548_v44  ;;  %v550_v47 = vld [vmem:[#allocation8 + $0x50] sm:$0xff]  ;;  %v551_v48 = vld [vmem:[#allocation8 + $0x58] sm:$0xff]  ;;  %v552_v50 = vld [vmem:[#allocation8 + $0x60] sm:$0xff]  ;;  %p1183_p4 = pnand %p1182_p2, %p1176_p7 }
  0x91   : > { %947 = vmatprep.subr.bf16.mxu0 %v946_v35  ;;  %v966_v49 = vpack.c.bf16 %v551_v48, %v550_v47  ;;  %v553_v51 = vld [vmem:[#allocation8 + $0x68] sm:$0xff]  ;;  %v771_v53 = vld [vmem:[%s1590_s2] ss:$0 sm:$0xff]  ;;  %v554_v60 = vld [vmem:[#allocation8 + $0x70] sm:$0xff] }
  0x92   : > { %949 = vmatpush3.bf16.msra.mxu0 %v946_v35  ;;  %v970_v52 = vpack.c.bf16 %v553_v51, %v552_v50  ;;  %v555_v61 = vld [vmem:[#allocation8 + $0x78] sm:$0xff]  ;;  %v774_v63 = vld [vmem:[%s1592_s4] ss:$0 sm:$0xff] }
  0x93   : > { %925 = vmatpush3.bf16.msra.mxu1 %v922_v15  ;;  %951 = vmatprep.subr.bf16.mxu0 %v950_v37  ;;  %v974_v62 = vpack.c.bf16 %v555_v61, %v554_v60  ;;  %v775_v6 = vld [vmem:[%s1594_s6] ss:$0 sm:$0xff] }
  0x94   : > { %927 = vmatprep.subr.bf16.mxu1 %v926_v19 }
  0x96   : > { %953 = vmatpush3.bf16.msra.mxu0 %v950_v37 }
  0x97   : > { %929 = vmatpush3.bf16.msra.mxu1 %v926_v19  ;;  %955 = vmatprep.subr.bf16.mxu0 %v954_v40 }
  0x98   : > { %931 = vmatprep.subr.bf16.mxu1 %v930_v22 }
  0x9a   : > { %957 = vmatpush3.bf16.msra.mxu0 %v954_v40 }
  0x9b   : > { %933 = vmatpush3.bf16.msra.mxu1 %v930_v22  ;;  %959 = vmatprep.subr.bf16.mxu0 %v958_v43 }
  0x9c   : > { %935 = vmatprep.subr.bf16.mxu1 %v934_v25 }
  0x9e   : > { %961 = vmatpush3.bf16.msra.mxu0 %v958_v43 }
  0x9f   : > { %937 = vmatpush3.bf16.msra.mxu1 %v934_v25  ;;  %963 = vmatprep.subr.bf16.mxu0 %v962_v46 }
  0xa0   : > { %939 = vmatprep.subr.bf16.mxu1 %v938_v28 }
  0xa2   : > { %965 = vmatpush3.bf16.msra.mxu0 %v962_v46 }
  0xa3   : > { %941 = vmatpush3.bf16.msra.mxu1 %v938_v28  ;;  %967 = vmatprep.subr.bf16.mxu0 %v966_v49 }
  0xa4   : > { %943 = vmatprep.subr.bf16.mxu1 %v942_v31 }
  0xa6   : > { %969 = vmatpush3.bf16.msra.mxu0 %v966_v49 }
  0xa7   : > { %945 = vmatpush3.bf16.msra.mxu1 %v942_v31  ;;  %971 = vmatprep.subr.bf16.mxu0 %v970_v52 }
  0xaa   : > { %973 = vmatpush3.bf16.msra.mxu0 %v970_v52 }
  0xab   : > { %975 = vmatprep.subr.bf16.mxu0 %v974_v62 }
  0xae   : > { %977 = vmatpush3.bf16.msra.mxu0 %v974_v62 }
 0x163   : > { %v835_v54 = vpop.f32.mrb[0].mxu0 }
 0x164   : > { %v435_v55 = vadd.f32 %v835_v54, %v771_v53  ;;  %v429_v56 = vpop.f32.mrb[1].mxu0 }
 0x165   : > { %v430_v57 = vadd.f32 %v771_v53, %v429_v56 }
 0x166   : > { %v439_v59 = vmax.f32 %v435_v55, 0.0 }
 0x167   : > { %v438_v58 = vmax.f32 %v430_v57, 0.0 }
 0x169   : > { %868 = vmatprep.mubr.f32.mxu1 %v438_v58 }
 0x16a   : > { %869 = vmatmul.mubr.f32.vlgmr.msra.gmra.mrb[0].mxu1 %v439_v59 }
 0x23d   : > { %v870_v0 = vpop.f32.mrb[0].mxu1 }
 0x23e   : > { %v535_v1 = vadd.f32 %v870_v0, %v774_v63  ;;  %v529_v2 = vpop.f32.mrb[1].mxu1 }
 0x23f   : > { %v530_v3 = vadd.f32 %v774_v63, %v529_v2 }
 0x240   : > { %v539_v5 = vmax.f32 %v535_v1, 0.0 }
 0x241   : > { %v538_v4 = vmax.f32 %v530_v3, 0.0 }
 0x243   : > { %903 = vmatprep.mubr.f32.mxu0 %v538_v4 }
 0x244   : > { %904 = vmatmul.mubr.f32.vlgmr.msra.gmra.mrb[2].mxu0 %v539_v5 }
 0x317   : > { %v905_v7 = vpop.f32.mrb[2].mxu0 }
 0x318   : > { %v635_v8 = vadd.f32 %v905_v7, %v775_v6  ;;  %v629_v9 = vpop.f32.mrb[3].mxu0 }
 0x319   : > { %v630_v10 = vadd.f32 %v775_v6, %v629_v9 }
 0x31a   : > { %639 = vst [vmem:[%s340_s10 + $0x8] sm:$0xff] %v635_v8 }
 0x31b   : > { %638 = vst [vmem:[%s340_s10] sm:$0xff] %v630_v10 }
 0x31c   : > { %1186 = shalt.err (!%p1183_p4)
}
 0x31d   : > { %s1187_s13 = scalar_lea.hbm %s1544_s11, 256  ;;  %s1191_s12 = scalar_lea.hbm %s1595_s7, 512 }
 0x31e   : > { %p1188_p9 = scmp.ne.s32.totalorder %s1544_s11, %s1187_s13  ;;  %p1192_p8 = scmp.lt.u32.totalorder %s1544_s11, %s1595_s7 }
 0x31f   : > { %p1193_p13 = scmp.lt.u32.totalorder %s1191_s12, %s1187_s13  ;;  %p1195_p10 = scmp.lt.u32.totalorder %s1187_s13, %s1544_s11 }
 0x320   : > { %p1189_p0 = pnand %p1188_p9, %p1452_p5 }
 0x321   : > { %p1194_p6 = por %p1193_p13, %p1192_p8 }
 0x322   : > { %p1190_p11 = pneg %p1189_p0 }
 0x323   : > { %p1196_p3 = por %p1195_p10, %p1194_p6 }
 0x325   : > { %p1197_p7 = pnand %p1196_p3, %p1190_p11 }
 0x327   : > { %1200 = shalt.err (!%p1197_p7)
}
 0x328   : > { %s1256_s16 = smov 128   ;;  %s1257_s29 = smov 8  }
 0x329   : > { %992 = dma.vmem_to_hbm [thread:$0]  (%p1452_p5), %s1539_s14, 256, %s1544_s11, %s641_s23, %s1256_s16, %s1256_s16, %s1257_s29  }
 0x32a PF: > { %s1615_s8 = sld [smem:[#allocation15_spill]]  ;;  %s669_s28 = sand.u32 1, %s1235_s24  }
 0x32b   : > { %p1617_p1 = scmp.ge.s32.totalorder %s1247_s27, 2  ;;  %s670_s30 = scalar_lea.sflag [#allocation4], %s669_s28 }
 0x330   : > { %p1616_p12 = scmp.ne.s32.totalorder %s1615_s8, 0 }
 0x332   : > { %p1009_p2 = pnand %p1617_p1, %p1616_p12 }
 0x334   : > { %1230 = dma.done.wait (!%p1009_p2), %s670_s30, 256  }
 0x335   : > { %1232 = vsyncadd (!%p1009_p2), %s670_s30, 4294967040  ;;  %p22_p4 = scmp.ge.s32.totalorder %s1438_s22, 4   ;;  %s1618_s24 = smov %s1239_s25 }
 0x336   : > { %s1619_s25 = smov %s1243_s26  ;;  %s1620_s26 = smov %s1448_s18 }
 0x337   : > { %s1621_s27 = smov %s1438_s22  ;;  %24 = sbr.rel (!%p22_p4) target bundleno = 7 (0x7), region = 105 }
 0x33e   :  { %675 = vsyncpa [#allocation3], 1 }
 0x33f   :  { %677 = vsyncpa [#allocation3 + $0x1], 1 }
 0x340   :  { %678 = vsyncpa [#allocation6], 1 }
 0x341   :  { %679 = vsyncpa [#allocation9], 1 }
 0x342   :  { %680 = vsyncpa [#allocation4], 1 }
 0x343   :  { %682 = vsyncpa [#allocation4 + $0x1], 1 }

</bundles_post_ra>
